<compile_context>
chip_gen: v5e
topology: v5e:2x2
jax: 0.10.0
libtpu: 0.0.40
codegen_flags: <defaults>
</compile_context>

<pallas_src>
import functools

import jax
import jax.numpy as jnp
from jax.experimental import pallas as pl
from jax.experimental.pallas import tpu as pltpu

_LANES = 128
_SUBLANES = 8


def _round_up(x, q):
    return ((x + q - 1) // q) * q


# ----------------------------------------------------------------------------
# Pallas kernel: fused backbone (streaming GAP + linear) + projection head.
# Grid: (branch, batch_tile, hw_tile); branch 0 = query enc., 1 = momentum enc.
# ----------------------------------------------------------------------------
def _moco_branch_kernel(x_ref, wb_ref, bb_ref, w1_ref, b1_ref, w2_ref, b2_ref,
                        out_ref, acc_ref, *, lane_chunks, tail):
    # x_ref   : (tb, C, thw)      input tile for this (branch, batch, hw) step
    # wb_ref  : (C, F_pad)        backbone weight, pre-scaled by 1/HW
    # bb_ref  : (1, F_pad)        backbone bias
    # w1_ref  : (F_pad, F_pad)    projection head layer 1
    # b1_ref  : (1, F_pad)
    # w2_ref  : (F_pad, O_pad)    projection head layer 2
    # b2_ref  : (1, O_pad)
    # out_ref : (tb, O_pad)
    # acc_ref : (tb, C, 128) f32  lane-wide running spatial sum (VMEM scratch)
    h = pl.program_id(2)

    @pl.when(h == 0)
    def _():
        acc_ref[...] = jnp.zeros_like(acc_ref)

    # Streaming GAP: accumulate this tile into a lane-wide f32 accumulator with
    # pure VPU adds over static 128-lane chunks.  The single cross-lane (XLU)
    # reduce is deferred to the epilogue so the hw loop stays vld/VPU only and
    # the HBM DMA stream is the sole limiter.
    acc = acc_ref[...]
    for j in range(lane_chunks):
        acc = acc + x_ref[:, :, j * _LANES:(j + 1) * _LANES].astype(jnp.float32)
    acc_ref[...] = acc

    @pl.when(h == pl.num_programs(2) - 1)
    def _():
        # One cross-lane reduce per (branch, batch-tile).
        pooled = jnp.sum(acc, axis=-1)                               # (tb, C)
        if tail:   # static: only taken when n_hw == 1 and thw % 128 != 0
            start = lane_chunks * _LANES
            pooled = pooled + jnp.sum(
                x_ref[:, :, start:start + tail].astype(jnp.float32), axis=-1)
        # Backbone linear (GAP already applied via pooled sum * (wb / HW)).
        emb = jnp.dot(pooled, wb_ref[...],
                      preferred_element_type=jnp.float32) + bb_ref[...]
        # Projection head: Linear -> ReLU -> Linear (f32 for exact parity).
        hid = jnp.maximum(
            jnp.dot(emb, w1_ref[...],
                    preferred_element_type=jnp.float32) + b1_ref[...], 0.0)
        out = jnp.dot(hid, w2_ref[...],
                      preferred_element_type=jnp.float32) + b2_ref[...]
        out_ref[...] = out.astype(out_ref.dtype)


# ----------------------------------------------------------------------------
# VMEM-budget-aware tile selection.
# ----------------------------------------------------------------------------
def _choose_tiles(b_half, C, hw_pad, x_itemsize, out_itemsize, f_pad, o_pad,
                  budget_bytes, n_x_buffers, tb_cap=None, thw_cap=None):
    c_sub = _round_up(C, _SUBLANES)   # VMEM tiles pad the sublane (C) axis to 8

    # thw candidates: 128-multiples dividing hw_pad, else the full axis.
    if hw_pad % _LANES == 0:
        thw_cands = [d for d in range(_LANES, hw_pad + 1, _LANES)
                     if hw_pad % d == 0]
    else:
        thw_cands = [hw_pad]
    if thw_cap is not None:
        capped = [d for d in thw_cands if d <= thw_cap]
        thw_cands = capped or [min(thw_cands)]

    # tb must divide b_half and keep the (tb, O_pad) output block legal:
    # second-to-last block dim must be a multiple of 8 or the full dim.
    tb_cands = [d for d in range(1, b_half + 1)
                if b_half % d == 0 and (d % _SUBLANES == 0 or d == b_half)]
    if tb_cap is not None:
        capped = [d for d in tb_cands if d <= tb_cap]
        tb_cands = capped or [min(tb_cands)]

    # Per-branch weight blocks (f32), double-buffered by the pipeline.
    weight_bytes = 2 * 4 * (C * f_pad + f_pad + f_pad * f_pad + f_pad
                            + f_pad * o_pad + o_pad)

    def vmem_use(tb, thw):
        x_tile = tb * c_sub * thw * x_itemsize
        acc = tb * c_sub * _LANES * 4
        out_tile = 2 * tb * o_pad * out_itemsize
        return n_x_buffers * x_tile + weight_bytes + acc + out_tile, x_tile

    best = None        # (score, total, tb, thw)
    smallest = None    # (x_tile, total, tb, thw)
    for thw in thw_cands:
        for tb in tb_cands:
            total, x_tile = vmem_use(tb, thw)
            if smallest is None or x_tile < smallest[0]:
                smallest = (x_tile, total, tb, thw)
            if total <= budget_bytes:
                score = (tb * thw, thw)
                if best is None or score > best[0]:
                    best = (score, total, tb, thw)
    chosen = best if best is not None else smallest
    _, total, tb, thw = chosen
    return tb, thw, total


# ----------------------------------------------------------------------------
# Host wrapper.
# ----------------------------------------------------------------------------
def moco_forward(x, params_q, params_k, m=0.999, *, tb_cap=None, thw_cap=None):
    """MoCo forward.

    Args:
      x: (bsz, C, H, W) float32 or bfloat16, NCHW like the PyTorch module.
      params_q: dict of query-encoder params (wb, bb, w1, b1, w2, b2).
      params_k: dict of momentum-encoder params (same shapes).
      m: momentum coefficient.
      tb_cap / thw_cap: optional upper bounds on the tile sizes (testing).

    Returns:
      (out, new_params_k): out is (bsz, out_dim) = concat([out_q, out_k]).
    """
    bsz, C, H, W = x.shape
    assert bsz % 2 == 0, "MoCo forward expects an even batch (q/k halves)"
    b_half = bsz // 2
    hw = H * W
    num_ftrs = params_q["w1"].shape[0]
    out_dim = params_q["w2"].shape[1]

    # Momentum update of the key encoder (elementwise; plain-JAX glue).
    new_params_k = jax.tree_util.tree_map(
        lambda pk, pq: m * pk + (1.0 - m) * pq, params_k, params_q)

    # Flatten spatial dims; NO branch stack of x (branch is encoded in the
    # index_map), so the largest tensor is never copied on the host.
    x_flat = x.reshape(bsz, C, hw)
    if hw % _LANES != 0 and hw > 4096:
        # Large, lane-unaligned spatial extent: zero-pad (GAP sum unchanged)
        # so hw can be tiled into lane-dense 128-wide chunks.
        hw_pad = _round_up(hw, _LANES)
        x_flat = jnp.pad(x_flat, ((0, 0), (0, 0), (0, hw_pad - hw)))
    else:
        hw_pad = hw

    # Pad head widths to lane multiples (zero rows/cols are exact through the
    # Linear/ReLU/Linear head) so epilogue matmuls + output stores are dense.
    f_pad = _round_up(num_ftrs, _LANES)
    o_pad = _round_up(out_dim, _LANES)

    def pad2(a, rows, cols):
        return jnp.pad(a, ((0, rows - a.shape[0]), (0, cols - a.shape[1])))

    inv_hw = 1.0 / float(hw)   # true HW (zero padding contributes 0 to the sum)

    def pad_params(p):
        return {
            "wb": pad2(p["wb"], C, f_pad) * inv_hw,      # GAP 1/HW folded in
            "bb": pad2(p["bb"].reshape(1, -1), 1, f_pad),
            "w1": pad2(p["w1"], f_pad, f_pad),
            "b1": pad2(p["b1"].reshape(1, -1), 1, f_pad),
            "w2": pad2(p["w2"], f_pad, o_pad),
            "b2": pad2(p["b2"].reshape(1, -1), 1, o_pad),
        }

    pq = pad_params(params_q)
    pk = pad_params(new_params_k)

    def stack(name):
        return jnp.stack([pq[name], pk[name]], axis=0).astype(jnp.float32)

    wb, bb, w1, b1, w2, b2 = [stack(n)
                              for n in ("wb", "bb", "w1", "b1", "w2", "b2")]

    # VMEM-budget-aware tile selection (v7x: 64 MiB, v6e/v5e: 128 MiB).
    try:
        vmem_cap = int(pltpu.get_tpu_info().vmem_capacity_bytes)
    except Exception:                      # conservative fallback (v7x-sized)
        vmem_cap = 64 * 2**20
    budget = max(min(int(0.75 * vmem_cap), vmem_cap - (16 << 20)), 24 << 20)
    n_x_buffers = 3                        # triple-buffer the streaming input
    x_itemsize = jnp.dtype(x.dtype).itemsize
    tb, thw, vmem_est = _choose_tiles(
        b_half, C, hw_pad, x_itemsize, x_itemsize, f_pad, o_pad,
        budget, n_x_buffers, tb_cap=tb_cap, thw_cap=thw_cap)
    n_btiles = b_half // tb
    n_hw = hw_pad // thw
    assert thw % _LANES == 0 or n_hw == 1
    lane_chunks, tail = divmod(thw, _LANES)
    vmem_limit = int(min(vmem_cap, max(vmem_est + (8 << 20), 24 << 20)))

    kernel = functools.partial(_moco_branch_kernel,
                               lane_chunks=lane_chunks, tail=tail)
    out_shape = jax.ShapeDtypeStruct((2, b_half, o_pad), x.dtype)
    grid = (2, n_btiles, n_hw)

    def x_index(b, i, h):
        # Branch encoded in the row-block index (q rows first, then k rows).
        return (b * n_btiles + i, 0, h)

    def w_index(b, i, h):
        # Weight block depends only on the branch -> DMA'd exactly twice.
        return (b, 0, 0)

    weight_specs = [
        pl.BlockSpec((None, C, f_pad), w_index),
        pl.BlockSpec((None, 1, f_pad), w_index),
        pl.BlockSpec((None, f_pad, f_pad), w_index),
        pl.BlockSpec((None, 1, f_pad), w_index),
        pl.BlockSpec((None, f_pad, o_pad), w_index),
        pl.BlockSpec((None, 1, o_pad), w_index),
    ]
    # Output block index constant across h (the reduction axis) -> resident
    # tile written only at the last hw step.
    out_spec = pl.BlockSpec((None, tb, o_pad), lambda b, i, h: (b, i, 0))

    def build(x_buffers):
        if x_buffers == 2:
            x_spec = pl.BlockSpec((tb, C, thw), x_index)
        else:
            x_spec = pl.BlockSpec((tb, C, thw), x_index,
                                  pipeline_mode=pl.Buffered(x_buffers))
        return pl.pallas_call(
            kernel,
            out_shape=out_shape,
            grid_spec=pltpu.PrefetchScalarGridSpec(
                num_scalar_prefetch=0,
                grid=grid,
                in_specs=[x_spec] + weight_specs,
                out_specs=out_spec,
                scratch_shapes=[pltpu.VMEM((tb, C, _LANES), jnp.float32)]),
            compiler_params=pltpu.CompilerParams(
                # 2*n_btiles parallel blocks (always even -> both v7x cores
                # stay busy); hw is the sequential streaming reduction.
                dimension_semantics=("parallel", "parallel", "arbitrary"),
                vmem_limit_bytes=vmem_limit),
        )

    try:
        out = build(n_x_buffers)(x_flat, wb, bb, w1, b1, w2, b2)
    except Exception:
        # pl.Buffered / pipeline_mode unavailable in this build: fall back to
        # the default double-buffered pipeline (same tiles, they fit easily).
        out = build(2)(x_flat, wb, bb, w1, b1, w2, b2)

    # (2, b_half, O_pad) -> (bsz, O_pad) is a contiguous reshape; rows
    # [0, b_half) are out_q, rows [b_half, bsz) are out_k.
    out = out.reshape(bsz, o_pad)
    if o_pad != out_dim:
        out = out[:, :out_dim]
    # TODO(synk): training path (custom_vjp + stop_gradient on the k half and
    # the batch_shuffle/_batch_unshuffle option) is not implemented; forward
    # values match the torch module exactly.
    return out, new_params_k


# ----------------------------------------------------------------------------
# Test helpers.
# ----------------------------------------------------------------------------
def _init_params(key, C, num_ftrs, out_dim):
    """Deterministic PyTorch-Linear-style init (uniform +- 1/sqrt(fan_in))."""
    ks = jax.random.split(key, 6)

    def lin(k, fan_in, fan_out):
        bound = 1.0 / jnp.sqrt(fan_in)
        return jax.random.uniform(k, (fan_in, fan_out), jnp.float32, -bound, bound)

    def bias(k, fan_in, fan_out):
        bound = 1.0 / jnp.sqrt(fan_in)
        return jax.random.uniform(k, (fan_out,), jnp.float32, -bound, bound)

    return {
        "wb": lin(ks[0], C, num_ftrs), "bb": bias(ks[1], C, num_ftrs),
        "w1": lin(ks[2], num_ftrs, num_ftrs), "b1": bias(ks[3], num_ftrs, num_ftrs),
        "w2": lin(ks[4], num_ftrs, out_dim), "b2": bias(ks[5], num_ftrs, out_dim),
    }


def _reference_forward(x, params_q, params_k, m=0.999):
    """Pure-JAX reference (mirrors the PyTorch forward)."""
    bsz, C, H, W = x.shape
    b_half = bsz // 2
    pk = jax.tree_util.tree_map(lambda a, b: m * a + (1.0 - m) * b,
                                params_k, params_q)

    def branch(xb, p):
        pooled = xb.reshape(xb.shape[0], C, H * W).mean(axis=-1)
        emb = pooled @ p["wb"] + p["bb"]
        h = jnp.maximum(emb @ p["w1"] + p["b1"], 0.0)
        return h @ p["w2"] + p["b2"]

    out_q = branch(x[:b_half], params_q)
    out_k = branch(x[b_half:], pk)
    return jnp.concatenate([out_q, out_k], axis=0)


if __name__ == "__main__":
    # Small shapes: bsz=8 (4 per MoCo branch), C=4, H=W=16, num_ftrs=32, out=128.
    key = jax.random.PRNGKey(0)
    kx, kq = jax.random.split(key)

    bsz, C, H, W = 8, 4, 16, 16
    num_ftrs, out_dim, m = 32, 128, 0.999

    x = jax.random.normal(kx, (bsz, C, H, W), jnp.float32)
    params_q = _init_params(kq, C, num_ftrs, out_dim)
    # _init_momentum_encoder: momentum encoder starts as an exact copy.
    params_k = jax.tree_util.tree_map(lambda a: a.copy(), params_q)

    # thw_cap=128 forces 2 hw tiles so the streaming-accumulator path is used.
    out, _ = moco_forward(x, params_q, params_k, m=m, thw_cap=128)
    out = jax.block_until_ready(out)

    ref = _reference_forward(x, params_q, params_k, m=m)
    assert out.shape == (bsz, out_dim), out.shape
    assert jnp.allclose(out, ref, atol=5e-5, rtol=1e-5), "mismatch vs reference"

    print("KERNEL_OK")
</pallas_src>

<mosaic_0001>
module attributes {stable_mosaic.version = 11 : i64} {
  func.func @_moco_branch_kernel(%arg0: i32, %arg1: i32, %arg2: i32, %arg3: memref<4x4x128xf32, #tpu.memory_space<vmem>>, %arg4: memref<1x4x128xf32, #tpu.memory_space<vmem>>, %arg5: memref<1x1x128xf32, #tpu.memory_space<vmem>>, %arg6: memref<1x128x128xf32, #tpu.memory_space<vmem>>, %arg7: memref<1x1x128xf32, #tpu.memory_space<vmem>>, %arg8: memref<1x128x128xf32, #tpu.memory_space<vmem>>, %arg9: memref<1x1x128xf32, #tpu.memory_space<vmem>>, %arg10: memref<1x4x128xf32, #tpu.memory_space<vmem>>, %arg11: memref<4x4x128xf32, #tpu.memory_space<vmem>>) attributes {dimension_semantics = [#tpu.dimension_semantics<parallel>, #tpu.dimension_semantics<parallel>, #tpu.dimension_semantics<arbitrary>], iteration_bounds = array<i64: 2, 1, 2>, scalar_prefetch = 0 : i64, scratch_operands = 1 : i64, tpu.core_type = #tpu.core_type<tc>, window_params = [{transform_indices = @transform_0, window_bounds = array<i64: 4, 4, 128>}, {transform_indices = @transform_1, window_bounds = array<i64: 1, 4, 128>}, {transform_indices = @transform_2, window_bounds = array<i64: 1, 1, 128>}, {transform_indices = @transform_3, window_bounds = array<i64: 1, 128, 128>}, {transform_indices = @transform_4, window_bounds = array<i64: 1, 1, 128>}, {transform_indices = @transform_5, window_bounds = array<i64: 1, 128, 128>}, {transform_indices = @transform_6, window_bounds = array<i64: 1, 1, 128>}, {transform_indices = @transform_7, window_bounds = array<i64: 1, 4, 128>}]} {
    %c0_i32 = arith.constant 0 : i32
    %0 = arith.cmpi eq, %arg2, %c0_i32 : i32
    %1 = arith.extui %0 : i1 to i32
    %c0_i32_0 = arith.constant 0 : i32
    %2 = arith.cmpi ne, %1, %c0_i32_0 : i32
    scf.if %2 {
      %cst = arith.constant 0.000000e+00 : f32
      %10 = vector.broadcast %cst : f32 to vector<4x4x128xf32>
      %c0_10 = arith.constant 0 : index
      %c0_11 = arith.constant 0 : index
      %c0_12 = arith.constant 0 : index
      %11 = vector.load %arg11[%c0_10, %c0_11, %c0_12] : memref<4x4x128xf32, #tpu.memory_space<vmem>>, vector<4x4x128xf32>
      tpu.vector_store %arg11[%c0_10, %c0_11, %c0_12], %10 {strides = array<i32>} : memref<4x4x128xf32, #tpu.memory_space<vmem>>, vector<4x4x128xf32>,
    } else {
    }
    %c0 = arith.constant 0 : index
    %c0_1 = arith.constant 0 : index
    %c0_2 = arith.constant 0 : index
    %3 = vector.load %arg11[%c0, %c0_1, %c0_2] : memref<4x4x128xf32, #tpu.memory_space<vmem>>, vector<4x4x128xf32>
    %c0_3 = arith.constant 0 : index
    %c0_4 = arith.constant 0 : index
    %c0_5 = arith.constant 0 : index
    %4 = vector.load %arg3[%c0_3, %c0_4, %c0_5] : memref<4x4x128xf32, #tpu.memory_space<vmem>>, vector<4x4x128xf32>
    %5 = arith.addf %3, %4 : vector<4x4x128xf32>
    %c0_6 = arith.constant 0 : index
    %c0_7 = arith.constant 0 : index
    %c0_8 = arith.constant 0 : index
    %6 = vector.load %arg11[%c0_6, %c0_7, %c0_8] : memref<4x4x128xf32, #tpu.memory_space<vmem>>, vector<4x4x128xf32>
    tpu.vector_store %arg11[%c0_6, %c0_7, %c0_8], %5 {strides = array<i32>} : memref<4x4x128xf32, #tpu.memory_space<vmem>>, vector<4x4x128xf32>,
    %c1_i32 = arith.constant 1 : i32
    %7 = arith.cmpi eq, %arg2, %c1_i32 : i32
    %8 = arith.extui %7 : i1 to i32
    %c0_i32_9 = arith.constant 0 : i32
    %9 = arith.cmpi ne, %8, %c0_i32_9 : i32
    scf.if %9 {
      %cst = arith.constant dense<0.000000e+00> : vector<4x4xf32>
      %10 = vector.multi_reduction <add>, %5, %cst [2] : vector<4x4x128xf32> to vector<4x4xf32>
      %c0_10 = arith.constant 0 : index
      %c0_11 = arith.constant 0 : index
      %c0_12 = arith.constant 0 : index
      %11 = vector.load %arg4[%c0_10, %c0_11, %c0_12] : memref<1x4x128xf32, #tpu.memory_space<vmem>>, vector<1x4x128xf32>
      %12 = vector.shape_cast %11 : vector<1x4x128xf32> to vector<4x128xf32>
      %cst_13 = arith.constant dense<0.000000e+00> : vector<4x128xf32>
      %13 = tpu.matmul %10, %12, %cst_13 {dimension_numbers = #tpu.dot_dimension_numbers<[1], [0], [0], [1], [0, 0, 1, 1], [], []>} : vector<4x4xf32>, vector<4x128xf32>, vector<4x128xf32> -> vector<4x128xf32>
      %c0_14 = arith.constant 0 : index
      %c0_15 = arith.constant 0 : index
      %c0_16 = arith.constant 0 : index
      %14 = vector.load %arg5[%c0_14, %c0_15, %c0_16] : memref<1x1x128xf32, #tpu.memory_space<vmem>>, vector<1x1x128xf32>
      %15 = vector.shape_cast %14 : vector<1x1x128xf32> to vector<1x128xf32>
      %16 = vector.broadcast %15 : vector<1x128xf32> to vector<4x128xf32>
      %17 = arith.addf %13, %16 : vector<4x128xf32>
      %c0_17 = arith.constant 0 : index
      %c0_18 = arith.constant 0 : index
      %c0_19 = arith.constant 0 : index
      %18 = vector.load %arg6[%c0_17, %c0_18, %c0_19] : memref<1x128x128xf32, #tpu.memory_space<vmem>>, vector<1x128x128xf32>
      %19 = vector.shape_cast %18 : vector<1x128x128xf32> to vector<128x128xf32>
      %cst_20 = arith.constant dense<0.000000e+00> : vector<4x128xf32>
      %20 = tpu.matmul %17, %19, %cst_20 {dimension_numbers = #tpu.dot_dimension_numbers<[1], [0], [0], [1], [0, 0, 1, 1], [], []>} : vector<4x128xf32>, vector<128x128xf32>, vector<4x128xf32> -> vector<4x128xf32>
      %c0_21 = arith.constant 0 : index
      %c0_22 = arith.constant 0 : index
      %c0_23 = arith.constant 0 : index
      %21 = vector.load %arg7[%c0_21, %c0_22, %c0_23] : memref<1x1x128xf32, #tpu.memory_space<vmem>>, vector<1x1x128xf32>
      %22 = vector.shape_cast %21 : vector<1x1x128xf32> to vector<1x128xf32>
      %23 = vector.broadcast %22 : vector<1x128xf32> to vector<4x128xf32>
      %24 = arith.addf %20, %23 : vector<4x128xf32>
      %cst_24 = arith.constant 0.000000e+00 : f32
      %25 = vector.broadcast %cst_24 : f32 to vector<4x128xf32>
      %26 = arith.maximumf %24, %25 : vector<4x128xf32>
      %c0_25 = arith.constant 0 : index
      %c0_26 = arith.constant 0 : index
      %c0_27 = arith.constant 0 : index
      %27 = vector.load %arg8[%c0_25, %c0_26, %c0_27] : memref<1x128x128xf32, #tpu.memory_space<vmem>>, vector<1x128x128xf32>
      %28 = vector.shape_cast %27 : vector<1x128x128xf32> to vector<128x128xf32>
      %cst_28 = arith.constant dense<0.000000e+00> : vector<4x128xf32>
      %29 = tpu.matmul %26, %28, %cst_28 {dimension_numbers = #tpu.dot_dimension_numbers<[1], [0], [0], [1], [0, 0, 1, 1], [], []>} : vector<4x128xf32>, vector<128x128xf32>, vector<4x128xf32> -> vector<4x128xf32>
      %c0_29 = arith.constant 0 : index
      %c0_30 = arith.constant 0 : index
      %c0_31 = arith.constant 0 : index
      %30 = vector.load %arg9[%c0_29, %c0_30, %c0_31] : memref<1x1x128xf32, #tpu.memory_space<vmem>>, vector<1x1x128xf32>
      %31 = vector.shape_cast %30 : vector<1x1x128xf32> to vector<1x128xf32>
      %32 = vector.broadcast %31 : vector<1x128xf32> to vector<4x128xf32>
      %33 = arith.addf %29, %32 : vector<4x128xf32>
      %c0_32 = arith.constant 0 : index
      %c0_33 = arith.constant 0 : index
      %c0_34 = arith.constant 0 : index
      %34 = vector.load %arg10[%c0_32, %c0_33, %c0_34] : memref<1x4x128xf32, #tpu.memory_space<vmem>>, vector<1x4x128xf32>
      %35 = vector.shape_cast %34 : vector<1x4x128xf32> to vector<4x128xf32>
      %36 = vector.shape_cast %33 : vector<4x128xf32> to vector<1x4x128xf32>
      tpu.vector_store %arg10[%c0_32, %c0_33, %c0_34], %36 {strides = array<i32>} : memref<1x4x128xf32, #tpu.memory_space<vmem>>, vector<1x4x128xf32>,
    } else {
    }
    return
  }
  func.func @transform_0(%arg0: i32, %arg1: i32, %arg2: i32) -> (i32, i32, i32) {
    %c1_i32 = arith.constant 1 : i32
    %0 = arith.muli %arg0, %c1_i32 : i32
    %1 = arith.addi %0, %arg1 : i32
    %c0_i32 = arith.constant 0 : i32
    %c0_i32_0 = arith.constant 0 : i32
    return %1, %c0_i32, %arg2 : i32, i32, i32
  }
  func.func @transform_1(%arg0: i32, %arg1: i32, %arg2: i32) -> (i32, i32, i32) {
    %c0_i32 = arith.constant 0 : i32
    %c0_i32_0 = arith.constant 0 : i32
    %c0_i32_1 = arith.constant 0 : i32
    return %arg0, %c0_i32, %c0_i32_0 : i32, i32, i32
  }
  func.func @transform_2(%arg0: i32, %arg1: i32, %arg2: i32) -> (i32, i32, i32) {
    %c0_i32 = arith.constant 0 : i32
    %c0_i32_0 = arith.constant 0 : i32
    %c0_i32_1 = arith.constant 0 : i32
    return %arg0, %c0_i32, %c0_i32_0 : i32, i32, i32
  }
  func.func @transform_3(%arg0: i32, %arg1: i32, %arg2: i32) -> (i32, i32, i32) {
    %c0_i32 = arith.constant 0 : i32
    %c0_i32_0 = arith.constant 0 : i32
    %c0_i32_1 = arith.constant 0 : i32
    return %arg0, %c0_i32, %c0_i32_0 : i32, i32, i32
  }
  func.func @transform_4(%arg0: i32, %arg1: i32, %arg2: i32) -> (i32, i32, i32) {
    %c0_i32 = arith.constant 0 : i32
    %c0_i32_0 = arith.constant 0 : i32
    %c0_i32_1 = arith.constant 0 : i32
    return %arg0, %c0_i32, %c0_i32_0 : i32, i32, i32
  }
  func.func @transform_5(%arg0: i32, %arg1: i32, %arg2: i32) -> (i32, i32, i32) {
    %c0_i32 = arith.constant 0 : i32
    %c0_i32_0 = arith.constant 0 : i32
    %c0_i32_1 = arith.constant 0 : i32
    return %arg0, %c0_i32, %c0_i32_0 : i32, i32, i32
  }
  func.func @transform_6(%arg0: i32, %arg1: i32, %arg2: i32) -> (i32, i32, i32) {
    %c0_i32 = arith.constant 0 : i32
    %c0_i32_0 = arith.constant 0 : i32
    %c0_i32_1 = arith.constant 0 : i32
    return %arg0, %c0_i32, %c0_i32_0 : i32, i32, i32
  }
  func.func @transform_7(%arg0: i32, %arg1: i32, %arg2: i32) -> (i32, i32, i32) {
    %c0_i32 = arith.constant 0 : i32
    %c0_i32_0 = arith.constant 0 : i32
    return %arg0, %arg1, %c0_i32 : i32, i32, i32
  }
}

</mosaic_0001>

<bundles_post_ra>
// kernel: tpu_custom_call.1
= control target key start
LH: loop header
LB: loop body
LE: loop exit
PB: predicated region body
PF: predicated region fallthrough
CT: control target
= control target key end

     0   :  { %s1724_s0 = inlined_call_operand.hbm [shape: f32[8,4,256], index: 0, kind: input, shape index: {}]   ;;  %s1725_s1 = inlined_call_operand.hbm [shape: f32[2,4,128], index: 1, kind: input, shape index: {}]   ;;  %s1726_s2 = inlined_call_operand.hbm [shape: f32[2,1,128], index: 2, kind: input, shape index: {}]   ;;  %s1727_s3 = inlined_call_operand.hbm [shape: f32[2,128,128], index: 3, kind: input, shape index: {}]   ;;  %s1728_s4 = inlined_call_operand.vmem [shape: f32[2,1,128], index: 4, kind: input, shape index: {}]   ;;  %s1729_s5 = inlined_call_operand.hbm [shape: f32[2,128,128], index: 5, kind: input, shape index: {}]   ;;  %s1730_s6 = inlined_call_operand.vmem [shape: f32[2,1,128], index: 6, kind: input, shape index: {}]   ;;  %s1731_s7 = inlined_call_operand.hbm [shape: f32[2,4,128], index: 7, kind: output, shape index: {}]  }
   0x1   :  { %1749 = sst [smem:[#allocation31_spill]] %s1725_s1 }
   0x2   :  { %1750 = sst [smem:[#allocation32_spill]] %s1727_s3 }
   0x3   :  { %1751 = sst [smem:[#allocation33_spill]] %s1728_s4 }
   0x4   :  { %1752 = sst [smem:[#allocation34_spill]] %s1729_s5 }
   0x5   :  { %1753 = sst [smem:[#allocation35_spill]] %s1730_s6 }
   0x6   :  { %1754 = sst [smem:[#allocation36_spill]] %s1731_s7 }
   0x7   :  { %12 = vsyncpa [#allocation4], 0 }
   0x8   :  { %14 = vsyncpa [#allocation4 + $0x1], 0 }
   0x9   :  { %15 = vsyncpa [#allocation7], 0 }
   0xa   :  { %17 = vsyncpa [#allocation7 + $0x1], 0 }
   0xb   :  { %18 = vsyncpa [#allocation10], 0 }
   0xc   :  { %20 = vsyncpa [#allocation10 + $0x1], 0 }
   0xd   :  { %21 = vsyncpa [#allocation5], 0 }
   0xe   :  { %23 = vsyncpa [#allocation5 + $0x1], 0  ;;  %s1374_s24 = smov 0   ;;  %s1376_s25 = smov 0  }
   0xf   :  { %s1378_s26 = smov 0   ;;  %s1380_s27 = smov 0  }
  0x10   :  { %s1382_s28 = smov 0   ;;  %s1384_s29 = smov 0  }
  0x11   :  { %s1386_s30 = smov 0   ;;  %s1388_s8 = smov 0  }
  0x12   :  { %s1390_s9 = smov 0   ;;  %s1392_s10 = smov 0  }
  0x13   :  { %s1394_s11 = smov 0  }
  0x14 LB: > { %1755 = sst [smem:[#allocation17_spill]] %s1287_s24  ;;  %s1428_s12 = sadd.s32 4294967295, %s1327_s11   ;;  %s1327_s11 = sphi %s1394_s11, %s29_s11   ;;  %s1323_s10 = sphi %s1392_s10, %s1813_s10   ;;  %s1319_s9 = sphi %s1390_s9, %s1812_s9   ;;  %s1315_s8 = sphi %s1388_s8, %s1811_s8   ;;  %s1311_s30 = sphi %s1386_s30, %s1805_s30   ;;  %s1307_s29 = sphi %s1384_s29, %s1810_s29   ;;  %s1303_s28 = sphi %s1382_s28, %s1809_s28   ;;  %s1299_s27 = sphi %s1380_s27, %s1808_s27   ;;  %s1295_s26 = sphi %s1378_s26, %s1803_s26   ;;  %s1291_s25 = sphi %s1376_s25, %s1802_s25   ;;  %s1287_s24 = sphi %s1374_s24, %s1801_s24  }
  0x15   : > { %1756 = sst [smem:[#allocation18_spill]] %s1291_s25  ;;  %s885_s13 = sadd.s32 4294967294, %s1327_s11  }
  0x16   : > { %1757 = sst [smem:[#allocation19_spill]] %s1295_s26  ;;  %s41_s14 = sadd.s32 1, %s1319_s9 }
  0x17   : > { %1758 = sst [smem:[#allocation20_spill]] %s1311_s30  ;;  %s48_s15 = sadd.s32 1, %s1323_s10 }
  0x18   : > { %1759 = sst [smem:[#allocation21_spill]] %s1315_s8  ;;  %p42_p0 = scmp.ge.s32.totalorder %s41_s14, 2 }
  0x19   : > { %1760 = sst [smem:[#allocation22_spill]] %s1319_s9  ;;  %s59_s16 = sadd.s32 1, %s1307_s29 }
  0x1a   : > { %1761 = sst [smem:[#allocation23_spill]] %s1428_s12  ;;  %p66_p1 = scmp.ne.s32.totalorder %s1307_s29, %s1303_s28 }
  0x1b   : > { %p67_p2 = scmp.eq.s32.totalorder %s1327_s11, 0  ;;  %s1815_s14 = smov (%p42_p0, %s41_s14), 0 }
  0x1c   : > { %1762 = sst [smem:[#allocation24_spill]] %s1815_s14  ;;  %s1817_s15 = smov (!%p42_p0, %s48_s15), %s1323_s10 }
  0x1d   : > { %s55_s17 = ssub.s32 %s1319_s9, %s1815_s14  ;;  %p1444_p3 = por %p67_p2, %p66_p1 }
  0x1e   : > { %p50_p4 = scmp.ge.s32.totalorder %s1817_s15, 2  ;;  %p72_p5 = scmp.ne.s32.totalorder %s1303_s28, %s1299_s27 }
  0x1f   : > { %p73_p6 = scmp.eq.s32.totalorder %s1428_s12, 0  ;;  %s85_s19 = sadd.s32 1, %s1295_s26 }
  0x20   : > { %s1819_s15 = smov (%p50_p4, %s1817_s15), 0  ;;  %p92_p8 = scmp.ne.s32.totalorder %s1295_s26, %s1291_s25 }
  0x21   : > { %1764 = sst [smem:[#allocation25_spill]] %s1819_s15  ;;  %p1455_p7 = por %p73_p6, %p72_p5 }
  0x22   : > { %s54_s21 = ssub.s32 %s1323_s10, %s1819_s15  ;;  %p98_p9 = scmp.ne.s32.totalorder %s1291_s25, %s1287_s24 }
  0x23   : > { %s56_s22 = sor.u32 %s55_s17, %s54_s21  ;;  %p83_p10 = scmp.eq.s32.totalorder %s54_s21, 0 }
  0x24   : > { %p57_p11 = scmp.eq.s32.totalorder %s56_s22, 0  ;;  %p1467_p12 = por %p92_p8, %p67_p2 }
  0x25   : > { %s1472_s27 = scalar_select %p83_p10, %s1295_s26, %s85_s19  }
  0x26   : > { %s1475_s14 = scalar_select %p57_p11, %s1307_s29, %s59_s16  }
  0x27   : > { %1767 = sst [smem:[#allocation26_spill]] %s1472_s27  ;;  %p1479_p13 = por %p98_p9, %p73_p6 }
  0x28   : > { %1768 = sst [smem:[#allocation27_spill]] %s1475_s14  ;;  %p254_p0 = scmp.eq.s32.totalorder %s1428_s12, 3 }
  0x29   : > { %s1769_s7 = scalar_select %p1479_p13, 1, 0 }
  0x2a   : > { %p260_p1 = scmp.eq.s32.totalorder %s885_s13, 3  ;;  %p1484_p4 = por %p254_p0, %p92_p8 }
  0x2b   : > { %1770 = sst [smem:[#allocation28_spill]] %s1769_s7  ;;  %p949_p2 = scmp.lt.s32.totalorder %s1327_s11, 4 }
  0x2c   : > { %s1771_s17 = scalar_select %p1484_p4, 1, 0 }
  0x2d   : > { %p1489_p5 = por %p260_p1, %p98_p9  ;;  %p1498_p6 = pnand %p949_p2, %p1444_p3 }
  0x2e   : > { %1772 = sst [smem:[#allocation29_spill]] %s1771_s17  ;;  %s1503_s22 = sand.u32 1, %s1295_s26  }
  0x2f   : > { %s1773_s19 = scalar_select %p1489_p5, 1, 0 }
  0x30   : > { %s893_s13 = sshll.u32 %s1323_s10, 2  ;;  %s892_s15 = sshll.u32 %s1503_s22, 2 }
  0x31   : > { %1774 = sst [smem:[#allocation30_spill]] %s1773_s19  ;;  %s309_s16 = scalar_lea.vmem [#allocation6], %s892_s15 }
  0x32   : > { %s1776_s1 = sld [smem:[#allocation31_spill]]  ;;  %s317_s18 = sshll.u32 %s309_s16, 4  ;;  %s318_s18 = int_to_ptr.vmem [resolvable:$true] %s317_s18 }
  0x33   : > { %p1514_p3 = pnand %p949_p2, %p1467_p12  ;;  %s894_s17 = sshll.u32 %s1503_s22, 7 }
  0x34   : > { %p900_p8 = scmp.ge.s32.totalorder %s1327_s11, 1  ;;  %s1778_s30 = sand.u32 1, %s1327_s11  }
  0x35   : > { %s1522_s6 = scalar_lea.sflag [#allocation7], %s1778_s30  ;;  %p395_p9 = scmp.lt.s32.totalorder %s1327_s11, 5 }
  0x36   : > { %s915_s23 = sshll.u32 %s1323_s10, 7  ;;  %s345_s27 = scalar_lea.vmem [#allocation9], %s894_s17 }
  0x37   : > { %p1530_p10 = pnand %p900_p8, %p395_p9  ;;  %s353_s30 = sshll.u32 %s345_s27, 4  ;;  %s354_s30 = int_to_ptr.vmem [resolvable:$true] %s353_s30 }
  0x38   : > { %s313_s24 = scalar_lea.hbm %s1776_s1, %s893_s13  ;;  %s1780_s3 = sld [smem:[#allocation32_spill]] }
  0x39   : > { %s315_s19 = sshll.u32 %s313_s24, 4  ;;  %s373_s24 = scalar_lea.vmem [#allocation11], %s894_s17  ;;  %s316_s19 = int_to_ptr.hbm [resolvable:$true] %s315_s19 }
  0x3a   : > { %935 = dma.hbm_to_vmem [thread:$0]  (!%p1514_p3), %s316_s19, 64, %s318_s18, %s1522_s6  }
  0x3b   : > { %s381_s14 = sshll.u32 %s373_s24, 4  ;;  %s1781_s5 = sld [smem:[#allocation34_spill]]  ;;  %s1528_s14 = int_to_ptr.vmem [resolvable:$true] %s381_s14 }
  0x3c   : > { %s1782_s8 = sand.u32 1, %s1327_s11   ;;  %s1746_s25 = smov 128  }
  0x3d   : > { %s1543_s7 = scalar_lea.sflag [#allocation10], %s1782_s8  ;;  %s1745_s12 = smov 8  }
  0x3e   : > { %s350_s19 = scalar_lea.hbm %s1780_s3, %s915_s23  ;;  %s280_s27 = sand.u32 1, %s1307_s29  }
  0x3f   : > { %s351_s18 = sshll.u32 %s350_s19, 4  ;;  %s914_s16 = sshll.u32 %s1323_s10, 3  ;;  %s352_s18 = int_to_ptr.hbm [resolvable:$true] %s351_s18 }
  0x40   : > { %941 = dma.hbm_to_vmem [thread:$0]  (!%p1514_p3), %s352_s18, 2048, %s354_s30, %s1543_s7, %s1746_s25, %s1746_s25, %s1745_s12  }
  0x41   : > { %s378_s4 = scalar_lea.hbm %s1781_s5, %s915_s23  ;;  %s888_s1 = sshll.u32 %s280_s27, 4 }
  0x42   : > { %s379_s17 = sshll.u32 %s378_s4, 4  ;;  %s290_s23 = sadd.s32 %s1319_s9, %s914_s16  ;;  %s380_s17 = int_to_ptr.hbm [resolvable:$true] %s379_s17 }
  0x43   : > { %s891_s13 = sshll.u32 %s290_s23, 2  ;;  %s284_s8 = scalar_lea.vmem [#allocation3], %s888_s1 }
  0x44   : > { %s295_s19 = sshll.u32 %s284_s8, 4  ;;  %s292_s4 = scalar_lea.hbm %s1724_s0, %s891_s13  ;;  %s296_s19 = int_to_ptr.vmem [resolvable:$true] %s295_s19 }
  0x45   : > { %s293_s30 = sshll.u32 %s292_s4, 4  ;;  %s281_s18 = scalar_lea.sflag [#allocation4], %s280_s27  ;;  %s294_s30 = int_to_ptr.hbm [resolvable:$true] %s293_s30 }
  0x46   : > { %s1331_s12 = smov 64   ;;  %s1332_s25 = smov 4  }
  0x47   : > { %s1783_s16 = smov 128   ;;  %s330_s8 = scalar_lea.hbm %s1726_s2, %s1323_s10 }
  0x48   : > { %932 = dma.hbm_to_vmem [thread:$0]  (!%p1498_p6), %s294_s30, 256, %s296_s19, %s281_s18, %s1783_s16, %s1331_s12, %s1332_s25  }
  0x49   : > { %s332_s5 = sshll.u32 %s330_s8, 4  ;;  %s327_s9 = scalar_lea.vmem [#allocation8], %s1503_s22  ;;  %s333_s5 = int_to_ptr.hbm [resolvable:$true] %s332_s5 }
  0x4a   : > { %s334_s3 = sshll.u32 %s327_s9, 4  ;;  %s1784_s13 = smov 8   ;;  %s335_s3 = int_to_ptr.vmem [resolvable:$true] %s334_s3 }
  0x4b   : > { %938 = dma.hbm_to_vmem [thread:$0]  (!%p1514_p3), %s333_s5, 16, %s335_s3, %s1522_s6  }
  0x4c   : > { %944 = dma.hbm_to_vmem [thread:$0]  (!%p1514_p3), %s380_s17, 2048, %s1528_s14, %s1543_s7, %s1783_s16, %s1783_s16, %s1784_s13  }
  0x4d   : > { %399 = sbr.rel (%p1530_p10) target bundleno = 678 (0x2a6), region = 48  ;;  %s401_s25 = sand.u32 (!%p1530_p10), 1, %s1303_s28  }
  0x4e   : > { %s901_s12 = sshll.u32 (!%p1530_p10), %s401_s25, 4  ;;  %s402_s21 = scalar_lea.sflag (!%p1530_p10), [#allocation4], %s401_s25 }
  0x4f   : > { %s1578_s27 = scalar_lea.vmem (!%p1530_p10), [#allocation3], %s901_s12 }
  0x52   : > { %1270 = dma.done.wait (%p1455_p7), %s402_s21, 256  }
  0x53   : > { %1272 = vsyncadd (%p1455_p7), %s402_s21, 4294967040  ;;  %s1785_s5 = sld [smem:[#allocation23_spill]] }
  0x54   : > { %s1786_s6 = sld [smem:[#allocation18_spill]] }
  0x59   : > { %s411_s9 = sand.u32 1, %s1785_s5  }
  0x5a   : > { %s1586_s7 = sand.u32 1, %s1786_s6   ;;  %s412_s14 = scalar_lea.sflag [#allocation7], %s411_s9 }
  0x5b   : > { %s902_s22 = sshll.u32 %s1586_s7, 2 }
  0x5c   : > { %s1589_s15 = scalar_lea.vmem [#allocation6], %s902_s22 }
  0x5d   : > { %1274 = dma.done.wait (%p1479_p13), %s412_s14, 80  }
  0x5e   : > { %1276 = vsyncadd (%p1479_p13), %s412_s14, 4294967216  ;;  %s903_s20 = sshll.u32 %s1586_s7, 7  ;;  %s424_s17 = scalar_lea.vmem [#allocation8], %s1586_s7 }
  0x5f   : > { %s431_s19 = scalar_lea.sflag [#allocation10], %s411_s9  ;;  %s1597_s24 = scalar_lea.vmem [#allocation9], %s903_s20 }
  0x60   : > { %1278 = dma.done.wait (%p1479_p13), %s431_s19, 4096  }
  0x61   : > { %1280 = vsyncadd (%p1479_p13), %s431_s19, 4294963200  ;;  %s1788_s4 = sld [smem:[#allocation21_spill]]  ;;  %s1615_s25 = scalar_lea.vmem [#allocation11], %s903_s20 }
  0x62   : > { %s1789_s16 = sld [smem:[#allocation33_spill]]  ;;  %s1617_s12 = scalar_lea.vmem [#allocation12], %s902_s22 }
  0x63   : > { %s1790_s3 = sld [smem:[#allocation35_spill]] }
  0x64   : > { %s1791_s21 = sld [smem:[#allocation20_spill]] }
  0x67   : > { %p503_p7 = scmp.lt.s32.totalorder %s1788_s4, 1 }
  0x69   : > { %s1821_s4 = smov (!%p503_p7, %s1788_s4), 1 }
  0x6a   : > { %s505_s1 = scalar_lea.vmem %s1789_s16, %s1821_s4  ;;  %s508_s13 = scalar_lea.vmem %s1790_s3, %s1821_s4 }
  0x6b   : > { %p906_p11 = scmp.ne.s32.totalorder %s1791_s21, 0 }
  0x6d   : > { %512 = sbr.rel (%p906_p11) target bundleno = 119 (0x77), region = 72 }
  0x72   : > { %v1333_v0 = vmov 0.0  }
  0x73   : > { %513 = vst [vmem:[#allocation2] sm:$0xf] %v1333_v0 }
  0x74   : > { %514 = vst [vmem:[#allocation2 + $0x4] sm:$0xf] %v1333_v0 }
  0x75   : > { %515 = vst [vmem:[#allocation2 + $0x8] sm:$0xf] %v1333_v0 }
  0x76   : > { %516 = vst [vmem:[#allocation2 + $0xc] sm:$0xf] %v1333_v0 }
  0x77 PF: > { %v521_v2 = vld [vmem:[%s1578_s27] sm:$0xf]  ;;  %v522_v5 = vld [vmem:[%s1578_s27 + $0x4] sm:$0xf]  ;;  %v523_v7 = vld [vmem:[%s1578_s27 + $0x8] sm:$0xf] }
  0x78   : > { %v524_v11 = vld [vmem:[%s1578_s27 + $0xc] sm:$0xf]  ;;  %s1792_s5 = sld [smem:[#allocation20_spill]] }
  0x7a   : > { %v517_v1 = vld [vmem:[#allocation2] sm:$0xf] }
  0x7b   : > { %v518_v3 = vld [vmem:[#allocation2 + $0x4] sm:$0xf]  ;;  %v525_v4 = vadd.f32 %v521_v2, %v517_v1 }
  0x7c   : > { %v519_v6 = vld [vmem:[#allocation2 + $0x8] sm:$0xf]  ;;  %v526_v8 = vadd.f32 %v522_v5, %v518_v3 }
  0x7d   : > { %v527_v9 = vadd.f32 %v523_v7, %v519_v6  ;;  %v520_v10 = vld [vmem:[#allocation2 + $0xc] sm:$0xf]  ;;  %529 = vst [vmem:[#allocation2] sm:$0xf] %v525_v4 }
  0x7e   : > { %v528_v12 = vadd.f32 %v524_v11, %v520_v10  ;;  %530 = vst [vmem:[#allocation2 + $0x4] sm:$0xf] %v526_v8  ;;  %p907_p12 = scmp.ne.s32.totalorder %s1792_s5, 1 }
  0x7f   : > { %531 = vst [vmem:[#allocation2 + $0x8] sm:$0xf] %v527_v9 }
  0x80   : > { %532 = vst [vmem:[#allocation2 + $0xc] sm:$0xf] %v528_v12  ;;  %536 = sbr.rel (%p907_p12) target bundleno = 657 (0x291), region = 76 }
  0x85   : > { %vm537_vm0 = vcmask 1043456   ;;  %v550_v17 = vld [vmem:[%s1589_s15] sm:$0xf]  ;;  %v610_v20 = vld [vmem:[%s1597_s24 + $0x68] sm:$0xff]  ;;  %v609_v21 = vld [vmem:[%s1597_s24 + $0x60] sm:$0xff]  ;;  %v559_v31 = vlaneseq  ;;  %vm565_vm1 = vcmask 1041409  }
  0x86   : > { %v538_v13 = vsel %vm537_vm0, %v525_v4, 0.0  ;;  %v544_v14 = vsel %vm537_vm0, %v527_v9, 0.0  ;;  %v541_v15 = vsel %vm537_vm0, %v526_v8, 0.0  ;;  %v547_v16 = vsel %vm537_vm0, %v528_v12, 0.0  ;;  %908 = vmatpush.msk.msra.mxu0 %vm537_vm0, %v550_v17  ;;  %v612_v18 = vld [vmem:[%s1597_s24 + $0x78] sm:$0xff]  ;;  %v611_v19 = vld [vmem:[%s1597_s24 + $0x70] sm:$0xff] }
  0x87   : > { %539 = vadd.xlane.f32.xlu0 %v538_v13  ;;  %545 = vadd.xlane.f32.xlu1 %v544_v14  ;;  %v608_v22 = vld [vmem:[%s1597_s24 + $0x58] sm:$0xff]  ;;  %v607_v23 = vld [vmem:[%s1597_s24 + $0x50] sm:$0xff]  ;;  %v606_v24 = vld [vmem:[%s1597_s24 + $0x48] sm:$0xff]  ;;  %v560_v34 = vand.u32 127, %v559_v31  ;;  %vm567_vm2 = vcmask 1042434   ;;  %vm569_vm3 = vcmask 1043459  }
  0x88   : > { %617 = vmatpush.msra.mxu1 %v612_v18  ;;  %v605_v25 = vld [vmem:[%s1597_s24 + $0x40] sm:$0xff]  ;;  %v604_v26 = vld [vmem:[%s1597_s24 + $0x38] sm:$0xff]  ;;  %v603_v27 = vld [vmem:[%s1597_s24 + $0x30] sm:$0xff]  ;;  %vm571_vm4 = vcmask 31744  }
  0x89   : > { %v602_v30 = vld [vmem:[%s1597_s24 + $0x28] sm:$0xff]  ;;  %v601_v32 = vld [vmem:[%s1597_s24 + $0x20] sm:$0xff]  ;;  %v600_v33 = vld [vmem:[%s1597_s24 + $0x18] sm:$0xff] }
  0x8a   : > { %618 = vmatpush.msra.mxu1 %v611_v19  ;;  %v599_v35 = vld [vmem:[%s1597_s24 + $0x10] sm:$0xff]  ;;  %v598_v45 = vld [vmem:[%s1597_s24 + $0x8] sm:$0xff]  ;;  %v597_v46 = vld [vmem:[%s1597_s24] sm:$0xff] }
  0x8b   : > { %v653_v47 = vld [vmem:[%s1615_s25 + $0x78] sm:$0xff]  ;;  %v652_v48 = vld [vmem:[%s1615_s25 + $0x70] sm:$0xff]  ;;  %v651_v49 = vld [vmem:[%s1615_s25 + $0x68] sm:$0xff] }
  0x8c   : > { %619 = vmatpush.msra.mxu1 %v610_v20  ;;  %658 = vmatpush.msra.mxu2 %v653_v47  ;;  %v650_v50 = vld [vmem:[%s1615_s25 + $0x60] sm:$0xff]  ;;  %v649_v51 = vld [vmem:[%s1615_s25 + $0x58] sm:$0xff]  ;;  %v648_v52 = vld [vmem:[%s1615_s25 + $0x50] sm:$0xff] }
  0x8d   : > { %v647_v53 = vld [vmem:[%s1615_s25 + $0x48] sm:$0xff]  ;;  %v646_v54 = vld [vmem:[%s1615_s25 + $0x40] sm:$0xff]  ;;  %v645_v55 = vld [vmem:[%s1615_s25 + $0x38] sm:$0xff] }
  0x8e   : > { %620 = vmatpush.msra.mxu1 %v609_v21  ;;  %659 = vmatpush.msra.mxu2 %v652_v48  ;;  %v644_v56 = vld [vmem:[%s1615_s25 + $0x30] sm:$0xff]  ;;  %v643_v57 = vld [vmem:[%s1615_s25 + $0x28] sm:$0xff]  ;;  %v642_v58 = vld [vmem:[%s1615_s25 + $0x20] sm:$0xff] }
  0x8f   : > { %542 = vadd.xlane.f32.xlu0 %v541_v15  ;;  %548 = vadd.xlane.f32.xlu1 %v547_v16  ;;  %v641_v59 = vld [vmem:[%s1615_s25 + $0x18] sm:$0xff]  ;;  %v1044_v60 = vld [vmem:[%s424_s17] ss:$0 sm:$0xff]  ;;  %v640_v63 = vld [vmem:[%s1615_s25 + $0x10] sm:$0xff] }
  0x90   : > { %621 = vmatpush.msra.mxu1 %v608_v22  ;;  %660 = vmatpush.msra.mxu2 %v651_v49  ;;  %v639_v0 = vld [vmem:[%s1615_s25 + $0x8] sm:$0xff]  ;;  %v638_v1 = vld [vmem:[%s1615_s25] sm:$0xff] }
  0x91   : > { %v1045_v2 = vld [vmem:[%s505_s1] ss:$0 sm:$0xff] }
  0x92   : > { %622 = vmatpush.msra.mxu1 %v607_v23  ;;  %661 = vmatpush.msra.mxu2 %v650_v50  ;;  %v1046_v6 = vld [vmem:[%s508_s13] ss:$0 sm:$0xff] }
  0x94   : > { %623 = vmatpush.msra.mxu1 %v606_v24  ;;  %662 = vmatpush.msra.mxu2 %v649_v51 }
  0x96   : > { %624 = vmatpush.msra.mxu1 %v605_v25  ;;  %663 = vmatpush.msra.mxu2 %v648_v52 }
  0x98   : > { %625 = vmatpush.msra.mxu1 %v604_v26  ;;  %664 = vmatpush.msra.mxu2 %v647_v53 }
  0x9a   : > { %626 = vmatpush.msra.mxu1 %v603_v27  ;;  %665 = vmatpush.msra.mxu2 %v646_v54 }
  0x9c   : > { %627 = vmatpush.msra.mxu1 %v602_v30  ;;  %666 = vmatpush.msra.mxu2 %v645_v55 }
  0x9e   : > { %628 = vmatpush.msra.mxu1 %v601_v32  ;;  %667 = vmatpush.msra.mxu2 %v644_v56 }
  0xa0   : > { %629 = vmatpush.msra.mxu1 %v600_v33  ;;  %668 = vmatpush.msra.mxu2 %v643_v57 }
  0xa2   : > { %630 = vmatpush.msra.mxu1 %v599_v35  ;;  %669 = vmatpush.msra.mxu2 %v642_v58 }
  0xa4   : > { %631 = vmatpush.msra.mxu1 %v598_v45  ;;  %670 = vmatpush.msra.mxu2 %v641_v59 }
  0xa6   : > { %632 = vmatpush.msra.mxu1 %v597_v46  ;;  %671 = vmatpush.msra.mxu2 %v640_v63 }
  0xa8   : > { %672 = vmatpush.msra.mxu2 %v639_v0 }
  0xaa   : > { %673 = vmatpush.msra.mxu2 %v638_v1 }
  0xfa   : > { %v540_v28 = vpop.xlane.xlu0 %539  ;;  %v546_v29 = vpop.xlane.xlu1 %545 }
  0xfb   : > { %v561_v38 = vperm.slane %v540_v28, %v560_v34  ;;  %v563_v41 = vperm.slane %v546_v29, %v560_v34 }
 0x102   : > { %v543_v36 = vpop.xlane.xlu0 %542  ;;  %v549_v37 = vpop.xlane.xlu1 %548 }
 0x103   : > { %v562_v39 = vperm.slane %v543_v36, %v560_v34  ;;  %v564_v40 = vperm.slane %v549_v37, %v560_v34 }
 0x105   : > { %v566_v42 = vsel %vm565_vm1, %v562_v39, %v561_v38 }
 0x106   : > { %v568_v43 = vsel %vm567_vm2, %v563_v41, %v566_v42 }
 0x107   : > { %v570_v44 = vsel %vm569_vm3, %v564_v40, %v568_v43 }
 0x108   : > { %909 = vmatmul.msk.f32.vlgmr.msra.gmra.mxu0 %vm571_vm4, %v570_v44 }
 0x185   : > { %v594_v61 = vpop.f32.mrf.mxu0 }
 0x186   : > { %v595_v62 = vadd.f32 %v1044_v60, %v594_v61 }
 0x188   : > { %633 = vmatmul.f32.vlgmr.msra.gmra.mxu1 %v595_v62 }
 0x205   : > { %v634_v3 = vpop.f32.mrf.mxu1 }
 0x206   : > { %v635_v4 = vadd.f32 %v1045_v2, %v634_v3 }
 0x208   : > { %v637_v5 = vmax.f32 %v635_v4, 0.0 }
 0x20a   : > { %674 = vmatmul.f32.vlgmr.msra.gmra.mxu2 %v637_v5 }
 0x28d   : > { %v675_v7 = vpop.f32.mrf.mxu2 }
 0x28e   : > { %v676_v8 = vadd.f32 %v1046_v6, %v675_v7 }
 0x290   : > { %678 = vst [vmem:[%s1617_s12] sm:$0xf] %v676_v8 }
 0x291 PF: > { %s1795_s15 = sld [smem:[#allocation21_spill]]  ;;  %s693_s1 = sshll.u32 %s1617_s12, 4  ;;  %s694_s1 = int_to_ptr.vmem [resolvable:$true] %s693_s1 }
 0x292   : > { %s1797_s30 = sld [smem:[#allocation36_spill]]  ;;  %s680_s8 = scalar_lea.sflag [#allocation5], %s1586_s7 }
 0x297   : > { %s911_s17 = sshll.u32 %s1795_s15, 2 }
 0x298   : > { %s1798_s18 = smov %s1797_s30  ;;  %s691_s16 = scalar_lea.hbm %s1797_s30, %s911_s17 }
 0x299   : > { %s695_s23 = sshll.u32 %s691_s16, 4  ;;  %s1217_s21 = scalar_lea.hbm %s1798_s18, 8  ;;  %s696_s23 = int_to_ptr.hbm [resolvable:$true] %s695_s23 }
 0x29a   : > { %s1211_s4 = sshra.s32 %s696_s23, 4  ;;  %s1212_s4 = int_to_ptr.hbm [resolvable:$true] %s1211_s4 }
 0x29b   : > { %s1213_s3 = scalar_lea.hbm %s1212_s4, 4  ;;  %p1218_p2 = scmp.lt.s32.totalorder %s1212_s4, %s1798_s18 }
 0x29c   : > { %p1214_p13 = scmp.ne.s32.totalorder %s1212_s4, %s1213_s3  ;;  %p1219_p6 = scmp.lt.s32.totalorder %s1217_s21, %s1213_s3 }
 0x29e   : > { %p1215_p0 = pnand %p1214_p13, %p1484_p4  ;;  %p1220_p3 = por %p1219_p6, %p1218_p2 }
 0x2a0   : > { %p1216_p1 = pneg %p1215_p0 }
 0x2a2   : > { %p1221_p8 = pnand %p1220_p3, %p1216_p1 }
 0x2a4   : > { %1224 = shalt.err (!%p1221_p8)
}
 0x2a5   : > { %927 = dma.vmem_to_hbm [thread:$0]  (%p1484_p4), %s694_s1, 64, %s696_s23, %s680_s8  }
 0x2a6 PF: > { %s1799_s7 = sld [smem:[#allocation17_spill]]  ;;  %p950_p9 = scmp.ge.s32.totalorder %s1327_s11, 2 }
 0x2a8   : > { %p946_p10 = pnand %p950_p9, %p1489_p5 }
 0x2aa   : > { %p947_p7 = pneg %p946_p10 }
 0x2ac   : > { %s707_s6 = sand.u32 1, %s1799_s7  }
 0x2ad   : > { %s708_s26 = scalar_lea.sflag [#allocation5], %s707_s6 }
 0x2ae   : > { %1282 = dma.done.wait (%p947_p7), %s708_s26, 64  }
 0x2af   : > { %1284 = vsyncadd (%p947_p7), %s708_s26, 4294967232  ;;  %s29_s11 = sadd.s32 1, %s1327_s11   ;;  %s1801_s24 = sld [smem:[#allocation18_spill]] }
 0x2b0   : > { %p26_p11 = scmp.ge.s32.totalorder %s29_s11, 6   ;;  %s1802_s25 = sld [smem:[#allocation19_spill]] }
 0x2b1   : > { %s1803_s26 = sld [smem:[#allocation26_spill]]  ;;  %s1808_s27 = smov %s1303_s28 }
 0x2b2   : > { %s1804_s9 = sld [smem:[#allocation27_spill]]  ;;  %s1809_s28 = smov %s1307_s29 }
 0x2b3   : > { %s1805_s30 = sld [smem:[#allocation22_spill]]  ;;  %s1811_s8 = smov %s1323_s10 }
 0x2b4   : > { %s1806_s22 = sld [smem:[#allocation24_spill]] }
 0x2b5   : > { %s1807_s14 = sld [smem:[#allocation25_spill]] }
 0x2b7   :  { %28 = sbr.rel (!%p26_p11) target bundleno = 20 (0x14), region = 155 }
 0x2b8   : > { %s1810_s29 = smov %s1804_s9 }
 0x2ba   : > { %s1812_s9 = smov %s1806_s22 }
 0x2bb   : > { %s1813_s10 = smov %s1807_s14 }
 0x2bc   :  { %714 = vsyncpa [#allocation4], 1 }
 0x2bd   :  { %716 = vsyncpa [#allocation4 + $0x1], 1 }
 0x2be   :  { %717 = vsyncpa [#allocation7], 1 }
 0x2bf   :  { %719 = vsyncpa [#allocation7 + $0x1], 1 }
 0x2c0   :  { %720 = vsyncpa [#allocation10], 1 }
 0x2c1   :  { %722 = vsyncpa [#allocation10 + $0x1], 1 }
 0x2c2   :  { %723 = vsyncpa [#allocation5], 1 }
 0x2c3   :  { %725 = vsyncpa [#allocation5 + $0x1], 1 }

</bundles_post_ra>
